<compile_context>
chip_gen: v6e
topology: v6e:2x2x1
jax: 0.10.0
libtpu: 0.0.40
codegen_flags: <defaults>
</compile_context>

<pallas_src>
import functools

import jax
import jax.numpy as jnp
import numpy as np
from jax import lax
from jax.experimental import pallas as pl
from jax.experimental.pallas import tpu as pltpu

_LANE = 128
_SUBLANE = 8
# Double-buffered working-set budget for the streamed tensors (logits tiles +
# lane-padded target columns + scratch).  Leaves ample headroom inside v7x's
# 64 MiB physical VMEM per TensorCore.
_WORKING_SET_BYTES = 24 * 1024 * 1024
_VMEM_LIMIT_CAP = 40 * 1024 * 1024   # never request v7x's full 64 MiB


def _round_up(x: int, m: int) -> int:
    return ((x + m - 1) // m) * m


def _vmem_limit(working_bytes: int) -> int:
    return int(min(_VMEM_LIMIT_CAP, max(16 * 2**20, working_bytes + 6 * 2**20)))


# --------------------------------------------------------------------------
# Path 1: full class axis in one block, batch-tiled grid.
# --------------------------------------------------------------------------
def _gce_tile_sum_kernel(x_ref, t_ref, out_ref, *, q, epsilon, n_rows, tm):
    """One row-tile: per-row GCE loss via log-sum-exp, masked in-tile sum."""
    i = pl.program_id(0)

    x_native = x_ref[...]                                     # (TM, C) native dtype
    x = x_native.astype(jnp.float32)                          # (TM, C)
    t = t_ref[...]                                            # (TM, 1) int32

    # Row-wise log-sum-exp pieces along the class (lane) axis.
    m = jnp.max(x, axis=-1, keepdims=True)                    # (TM, 1)
    denom = jnp.sum(jnp.exp(x - m), axis=-1, keepdims=True)   # (TM, 1), >= 1

    # Gather the target logit with a one-hot select on the native-dtype tile
    # (half-width select for bf16 inputs), then upcast the (TM, 1) result.
    col = lax.broadcasted_iota(jnp.int32, x_native.shape, 1)  # (TM, C)
    zero = jnp.zeros((), dtype=x_native.dtype)
    x_t = jnp.sum(jnp.where(col == t, x_native, zero),
                  axis=-1, keepdims=True).astype(jnp.float32)  # (TM, 1)

    # Exact log-softmax of the target class; no approximate reciprocal.
    log_p = x_t - m - jnp.log(denom)                          # (TM, 1)
    p = jnp.exp(log_p) + epsilon
    loss = (1.0 - jnp.power(p, q)) * (1.0 / q)                # (TM, 1)

    # Mask padded rows of the edge tile with a select (NaN-safe), reduce the
    # whole tile to one scalar and fill a lane-dense (1, 8, 128) output block.
    row = i * tm + lax.broadcasted_iota(jnp.int32, (tm, 1), 0)
    loss = jnp.where(row < n_rows, loss, 0.0)
    tile_sum = jnp.sum(loss, axis=0, keepdims=True)           # (1, 1)
    out_ref[...] = jnp.broadcast_to(tile_sum, out_ref.shape)


# --------------------------------------------------------------------------
# Path 2: class axis tiled (online softmax) for very large C.
# --------------------------------------------------------------------------
def _gce_ctiled_kernel(x_ref, t_ref, out_ref, m_sc, l_sc, xt_sc, *,
                       q, epsilon, n_rows, n_cols, tm, tc):
    i = pl.program_id(0)
    j = pl.program_id(1)

    @pl.when(j == 0)
    def _init():
        m_sc[...] = jnp.full_like(m_sc, -jnp.inf)
        l_sc[...] = jnp.zeros_like(l_sc)
        xt_sc[...] = jnp.zeros_like(xt_sc)

    x = x_ref[...].astype(jnp.float32)                        # (TM, TC)
    t = t_ref[...]                                            # (TM, 1) int32

    col = j * tc + lax.broadcasted_iota(jnp.int32, x.shape, 1)
    col_valid = col < n_cols                                  # mask padded class cols

    # Target-logit gather: exactly one class tile contributes per row.
    xt_sc[...] += jnp.sum(jnp.where((col == t) & col_valid, x, 0.0),
                          axis=-1, keepdims=True)

    # Online softmax (running max / running exp-sum) across class tiles.
    x_m = jnp.where(col_valid, x, -jnp.inf)
    m_new = jnp.maximum(m_sc[...], jnp.max(x_m, axis=-1, keepdims=True))
    scale = jnp.exp(m_sc[...] - m_new)
    l_sc[...] = scale * l_sc[...] + jnp.sum(jnp.exp(x_m - m_new),
                                            axis=-1, keepdims=True)
    m_sc[...] = m_new

    @pl.when(j == pl.num_programs(1) - 1)
    def _finalize():
        log_p = xt_sc[...] - m_sc[...] - jnp.log(l_sc[...])
        p = jnp.exp(log_p) + epsilon
        loss = (1.0 - jnp.power(p, q)) * (1.0 / q)            # (TM, 1)
        row = i * tm + lax.broadcasted_iota(jnp.int32, (tm, 1), 0)
        loss = jnp.where(row < n_rows, loss, 0.0)
        tile_sum = jnp.sum(loss, axis=0, keepdims=True)       # (1, 1)
        out_ref[...] = jnp.broadcast_to(tile_sum, out_ref.shape)


# --------------------------------------------------------------------------
# Wrapper.
# --------------------------------------------------------------------------
def _row_tile_from_budget(n: int, bytes_per_row_dbuf: int,
                          extra_per_row: int, row_tile) -> int:
    """TM: multiple of 8, sized from the VMEM budget; >=2 grid steps when the
    padded batch allows it (megacore on v7x); optional user override."""
    n_pad = _round_up(n, _SUBLANE)
    tm = _WORKING_SET_BYTES // (2 * bytes_per_row_dbuf + extra_per_row)
    tm = max(_SUBLANE, (tm // _SUBLANE) * _SUBLANE)
    if n_pad >= 2 * _SUBLANE:
        tm = min(tm, _round_up(n_pad // 2, _SUBLANE))  # at least 2 grid steps
    else:
        tm = min(tm, n_pad)
    if row_tile is not None:
        tm = max(_SUBLANE, _round_up(min(int(row_tile), n_pad), _SUBLANE))
    return tm


def generalized_cross_entropy(logits: jax.Array,
                              targets: jax.Array,
                              q: float = 0.7,
                              epsilon: float = 1e-10,
                              row_tile: int | None = None,
                              class_tile: int | None = None) -> jax.Array:
    """Pallas-backed GCE loss. logits: (N, C) float (f32/bf16), targets: (N,) int."""
    n, c = logits.shape
    itemsize = jnp.dtype(logits.dtype).itemsize
    t2 = targets.astype(jnp.int32).reshape(n, 1)

    c_lanes = _round_up(c, _LANE)
    tgt_row_bytes = _LANE * 4          # (TM, 1) int32 block lane-pads to 128

    # Use the class-tiled path only when even an 8-row, full-C double-buffered
    # block would blow the working-set budget (huge vocab), or when forced.
    force_ctile = class_tile is not None
    needs_ctile = 2 * _SUBLANE * (c_lanes * itemsize + tgt_row_bytes) > _WORKING_SET_BYTES

    if not (force_ctile or needs_ctile):
        # ------------------------- full-C path -------------------------
        bytes_per_row = c_lanes * itemsize + tgt_row_bytes
        tm = _row_tile_from_budget(n, bytes_per_row, 0, row_tile)
        grid_rows = pl.cdiv(n, tm)
        working = 2 * tm * bytes_per_row + 2 * _SUBLANE * _LANE * 4

        kernel = functools.partial(_gce_tile_sum_kernel, q=q, epsilon=epsilon,
                                   n_rows=n, tm=tm)
        per_tile = pl.pallas_call(
            kernel,
            out_shape=jax.ShapeDtypeStruct((grid_rows, _SUBLANE, _LANE),
                                           jnp.float32),
            grid=(grid_rows,),
            in_specs=[
                pl.BlockSpec((tm, c), lambda i: (i, 0)),    # logits (native dtype)
                pl.BlockSpec((tm, 1), lambda i: (i, 0)),    # targets
            ],
            out_specs=pl.BlockSpec((1, _SUBLANE, _LANE), lambda i: (i, 0, 0)),
            compiler_params=pltpu.CompilerParams(
                dimension_semantics=("parallel",),
                vmem_limit_bytes=_vmem_limit(working),
            ),
        )(logits, t2)
    else:
        # ------------------------ class-tiled path ------------------------
        if class_tile is None:
            tc = max(_LANE, ((8192 // itemsize) // _LANE) * _LANE)  # ~8 KiB/row
        else:
            tc = _round_up(int(class_tile), _LANE)
        tc = min(tc, c_lanes)
        grid_c = pl.cdiv(c, tc)

        bytes_per_row = tc * itemsize + tgt_row_bytes       # double-buffered
        scratch_per_row = 3 * _LANE * 4                     # m / l / x_t scratch
        tm = _row_tile_from_budget(n, bytes_per_row, scratch_per_row, row_tile)
        grid_rows = pl.cdiv(n, tm)
        working = tm * (2 * bytes_per_row + scratch_per_row) + 2 * _SUBLANE * _LANE * 4

        kernel = functools.partial(_gce_ctiled_kernel, q=q, epsilon=epsilon,
                                   n_rows=n, n_cols=c, tm=tm, tc=tc)
        per_tile = pl.pallas_call(
            kernel,
            out_shape=jax.ShapeDtypeStruct((grid_rows, _SUBLANE, _LANE),
                                           jnp.float32),
            grid=(grid_rows, grid_c),
            in_specs=[
                pl.BlockSpec((tm, tc), lambda i, j: (i, j)),   # logits tile
                pl.BlockSpec((tm, 1), lambda i, j: (i, 0)),    # targets
            ],
            out_specs=pl.BlockSpec((1, _SUBLANE, _LANE), lambda i, j: (i, 0, 0)),
            scratch_shapes=[
                pltpu.VMEM((tm, 1), jnp.float32),   # running max
                pltpu.VMEM((tm, 1), jnp.float32),   # running exp-sum
                pltpu.VMEM((tm, 1), jnp.float32),   # gathered target logit
            ],
            compiler_params=pltpu.CompilerParams(
                dimension_semantics=("parallel", "arbitrary"),
                vmem_limit_bytes=_vmem_limit(working),
            ),
        )(logits, t2)

    # Each grid step wrote its scalar partial sum broadcast over (8, 128);
    # pick one lane per tile and finish the tiny mean in JAX.
    return jnp.sum(per_tile[:, 0, 0]) / jnp.float32(n)


def _reference(logits, targets, q=0.7, epsilon=1e-10):
    p = jax.nn.softmax(logits.astype(jnp.float32), axis=-1)
    p = p[jnp.arange(p.shape[0]), targets]
    p = p + epsilon
    loss = (1.0 - jnp.power(p, q)) / q
    return jnp.mean(loss)


if __name__ == "__main__":
    key = jax.random.PRNGKey(0)
    k1, k2, k3, k4 = jax.random.split(key, 4)

    # --- Case 1: f32 logits, single row tile (minibatch=8, C=16) ---
    N, C = 8, 16
    logits = jax.random.normal(k1, (N, C), dtype=jnp.float32)
    targets = jax.random.randint(k2, (N,), 0, C, dtype=jnp.int32)
    out = jax.block_until_ready(generalized_cross_entropy(logits, targets, q=0.7))
    ref = jax.block_until_ready(_reference(logits, targets, q=0.7))
    assert np.allclose(np.asarray(out), np.asarray(ref), rtol=1e-3, atol=1e-5), (out, ref)

    # --- Case 2: bf16 logits shipped natively (half the HBM traffic) ---
    logits_bf16 = logits.astype(jnp.bfloat16)
    out_bf = jax.block_until_ready(
        generalized_cross_entropy(logits_bf16, targets, q=0.7))
    ref_bf = jax.block_until_ready(_reference(logits_bf16, targets, q=0.7))
    assert np.allclose(np.asarray(out_bf), np.asarray(ref_bf), rtol=2e-3, atol=2e-3), (
        out_bf, ref_bf)

    # --- Case 3: f32, N not a multiple of the row tile (edge-tile masking,
    #     >=2 grid steps for the parallel axis) ---
    N2, C2 = 20, 16
    logits2 = jax.random.normal(k3, (N2, C2), dtype=jnp.float32)
    targets2 = jax.random.randint(k4, (N2,), 0, C2, dtype=jnp.int32)
    out2 = jax.block_until_ready(generalized_cross_entropy(logits2, targets2, q=0.7))
    ref2 = jax.block_until_ready(_reference(logits2, targets2, q=0.7))
    assert np.allclose(np.asarray(out2), np.asarray(ref2), rtol=1e-3, atol=1e-5), (out2, ref2)

    # --- Case 4: class-tiled (online-softmax) path, forced at small shapes
    #     (exercises the large-vocab / v7x-VMEM fallback): C=300, TC=128 ---
    N3, C3 = 20, 300
    logits3 = jax.random.normal(k1, (N3, C3), dtype=jnp.float32)
    targets3 = jax.random.randint(k2, (N3,), 0, C3, dtype=jnp.int32)
    out3 = jax.block_until_ready(
        generalized_cross_entropy(logits3, targets3, q=0.7,
                                  row_tile=8, class_tile=128))
    ref3 = jax.block_until_ready(_reference(logits3, targets3, q=0.7))
    assert np.allclose(np.asarray(out3), np.asarray(ref3), rtol=1e-3, atol=1e-5), (out3, ref3)

    print("KERNEL_OK")
</pallas_src>

<mosaic_0001>
module attributes {stable_mosaic.version = 11 : i64} {
  func.func @_gce_tile_sum_kernel(%arg0: i32, %arg1: memref<8x16xf32, #tpu.memory_space<vmem>>, %arg2: memref<8x1xi32, #tpu.memory_space<vmem>>, %arg3: memref<1x8x128xf32, #tpu.memory_space<vmem>>) attributes {dimension_semantics = [#tpu.dimension_semantics<parallel>], iteration_bounds = array<i64: 1>, scalar_prefetch = 0 : i64, scratch_operands = 0 : i64, tpu.core_type = #tpu.core_type<tc>, window_params = [{transform_indices = @transform_0, window_bounds = array<i64: 8, 16>}, {transform_indices = @transform_1, window_bounds = array<i64: 8, 1>}, {transform_indices = @transform_2, window_bounds = array<i64: 1, 8, 128>}]} {
    %c0 = arith.constant 0 : index
    %c0_0 = arith.constant 0 : index
    %0 = vector.load %arg1[%c0, %c0_0] : memref<8x16xf32, #tpu.memory_space<vmem>>, vector<8x16xf32>
    %c0_1 = arith.constant 0 : index
    %c0_2 = arith.constant 0 : index
    %1 = vector.load %arg2[%c0_1, %c0_2] : memref<8x1xi32, #tpu.memory_space<vmem>>, vector<8x1xi32>
    %cst = arith.constant dense<0xFF800000> : vector<8xf32>
    %2 = vector.multi_reduction <maximumf>, %0, %cst [1] : vector<8x16xf32> to vector<8xf32>
    %3 = vector.shape_cast %2 : vector<8xf32> to vector<8x1xf32>
    %4 = vector.broadcast %3 : vector<8x1xf32> to vector<8x16xf32>
    %5 = arith.subf %0, %4 : vector<8x16xf32>
    %6 = math.exp %5 : vector<8x16xf32>
    %cst_3 = arith.constant dense<0.000000e+00> : vector<8xf32>
    %7 = vector.multi_reduction <add>, %6, %cst_3 [1] : vector<8x16xf32> to vector<8xf32>
    %8 = vector.shape_cast %7 : vector<8xf32> to vector<8x1xf32>
    %9 = tpu.iota {dimensions = array<i32: 1>} : vector<8x16xi32>
    %10 = vector.broadcast %1 : vector<8x1xi32> to vector<8x16xi32>
    %11 = arith.cmpi eq, %9, %10 : vector<8x16xi32>
    %cst_4 = arith.constant 0.000000e+00 : f32
    %12 = vector.broadcast %cst_4 : f32 to vector<8x16xf32>
    %13 = arith.select %11, %0, %12 : vector<8x16xi1>, vector<8x16xf32>
    %cst_5 = arith.constant dense<0.000000e+00> : vector<8xf32>
    %14 = vector.multi_reduction <add>, %13, %cst_5 [1] : vector<8x16xf32> to vector<8xf32>
    %15 = vector.shape_cast %14 : vector<8xf32> to vector<8x1xf32>
    %16 = arith.subf %15, %3 : vector<8x1xf32>
    %17 = math.log %8 : vector<8x1xf32>
    %18 = arith.subf %16, %17 : vector<8x1xf32>
    %19 = math.exp %18 : vector<8x1xf32>
    %cst_6 = arith.constant 1.000000e-10 : f32
    %20 = vector.broadcast %cst_6 : f32 to vector<8x1xf32>
    %21 = arith.addf %19, %20 : vector<8x1xf32>
    %cst_7 = arith.constant 0.699999988 : f32
    %22 = vector.broadcast %cst_7 : f32 to vector<8x1xf32>
    %23 = math.powf %21, %22 : vector<8x1xf32>
    %cst_8 = arith.constant 1.000000e+00 : f32
    %24 = vector.broadcast %cst_8 : f32 to vector<8x1xf32>
    %25 = arith.subf %24, %23 : vector<8x1xf32>
    %cst_9 = arith.constant 1.42857146 : f32
    %26 = vector.broadcast %cst_9 : f32 to vector<8x1xf32>
    %27 = arith.mulf %25, %26 : vector<8x1xf32>
    %c8_i32 = arith.constant 8 : i32
    %28 = arith.muli %arg0, %c8_i32 : i32
    %29 = tpu.iota {dimensions = array<i32: 0>} : vector<8x1xi32>
    %30 = vector.broadcast %28 : i32 to vector<8x1xi32>
    %31 = arith.addi %30, %29 : vector<8x1xi32>
    %c8_i32_10 = arith.constant 8 : i32
    %32 = vector.broadcast %c8_i32_10 : i32 to vector<8x1xi32>
    %33 = arith.cmpi slt, %31, %32 : vector<8x1xi32>
    %cst_11 = arith.constant 0.000000e+00 : f32
    %34 = vector.broadcast %cst_11 : f32 to vector<8x1xf32>
    %35 = arith.select %33, %27, %34 : vector<8x1xi1>, vector<8x1xf32>
    %cst_12 = arith.constant dense<0.000000e+00> : vector<1xf32>
    %36 = vector.multi_reduction <add>, %35, %cst_12 [0] : vector<8x1xf32> to vector<1xf32>
    %37 = vector.shape_cast %36 : vector<1xf32> to vector<1x1xf32>
    %38 = vector.shape_cast %37 : vector<1x1xf32> to vector<1x1x1xf32>
    %39 = vector.broadcast %38 : vector<1x1x1xf32> to vector<1x8x128xf32>
    %c0_13 = arith.constant 0 : index
    %c0_14 = arith.constant 0 : index
    %c0_15 = arith.constant 0 : index
    %40 = vector.load %arg3[%c0_13, %c0_14, %c0_15] : memref<1x8x128xf32, #tpu.memory_space<vmem>>, vector<1x8x128xf32>
    tpu.vector_store %arg3[%c0_13, %c0_14, %c0_15], %39 {strides = array<i32>} : memref<1x8x128xf32, #tpu.memory_space<vmem>>, vector<1x8x128xf32>,
    return
  }
  func.func @transform_0(%arg0: i32) -> (i32, i32) {
    %c0_i32 = arith.constant 0 : i32
    %c0_i32_0 = arith.constant 0 : i32
    return %arg0, %c0_i32 : i32, i32
  }
  func.func @transform_1(%arg0: i32) -> (i32, i32) {
    %c0_i32 = arith.constant 0 : i32
    %c0_i32_0 = arith.constant 0 : i32
    return %arg0, %c0_i32 : i32, i32
  }
  func.func @transform_2(%arg0: i32) -> (i32, i32, i32) {
    %c0_i32 = arith.constant 0 : i32
    %c0_i32_0 = arith.constant 0 : i32
    %c0_i32_1 = arith.constant 0 : i32
    return %arg0, %c0_i32, %c0_i32_0 : i32, i32, i32
  }
}

</mosaic_0001>

<bundles_post_ra>
// kernel: tpu_custom_call.1
= control target key start
LH: loop header
LB: loop body
LE: loop exit
PB: predicated region body
PF: predicated region fallthrough
CT: control target
= control target key end

     0   :  { %vm14_vm0 = vcmask 130048   ;;  %s162_s0 = inlined_call_operand.vmem [shape: f32[8,16], index: 0, kind: input, shape index: {}]   ;;  %s163_s1 = inlined_call_operand.vmem [shape: s32[8,1], index: 1, kind: input, shape index: {}]   ;;  %s164_s2 = inlined_call_operand.hbm [shape: f32[1,8,128], index: 2, kind: output, shape index: {}]  }
   0x1   :  { %v12_v0 = vld [vmem:[%s162_s0] sm:$0xff] }
   0x2   :  { %7 = vsyncpa [#allocation3], 0  ;;  %v15_v1 = vsel %vm14_vm0, %v12_v0, -inf  ;;  %v133_v2 = vmov 0   ;;  %v13_v3 = vld [vmem:[%s163_s1] sm:$0xff]  ;;  %v24_v7 = vlaneseq  ;;  %s134_s0 = smov [#allocation2]  }
   0x3   :  { %100 = vset.pattern.permute.xlu0 %v133_v2  ;;  %s64_s1 = sshll.u32 %s134_s0, 4  ;;  %s65_s1 = int_to_ptr.vmem [resolvable:$true] %s64_s1 }
   0x4   :  { %16 = vmax.xlane.f32.xlu0 %v15_v1  ;;  %v25_v8 = vand.u32 127, %v24_v7  ;;  %s111_s13 = scalar_lea.vmem %s65_s1, 128  ;;  %p116_p1 = scmp.lt.s32.totalorder %s65_s1, %s65_s1 }
   0x5   :  { %p112_p0 = scmp.ne.s32.totalorder %s65_s1, %s111_s13  ;;  %p117_p2 = scmp.lt.s32.totalorder %s111_s13, %s111_s13 }
   0x7   :  { %p118_p3 = por %p117_p2, %p116_p1 }
   0x9   :  { %p119_p4 = pnand %p118_p3, %p112_p0 }
  0x1a   :  { %27 = vperm.xlu0 %100, %v13_v3  }
  0x8d   :  { %v17_v4 = vpop.xlane.xlu0 %16 }
  0x8e   :  { %v18_v5 = vsub.f32 %v12_v0, %v17_v4 }
  0x90   :  { %v19_v6 = vmul.f32 1.442695, %v18_v5 }
  0x92   :  { %101 = vpow2.f32 %v19_v6 }
  0x95   :  { %v28_v9 = vpop.permute.xlu0 %27 }
  0x96   :  { %vm29_vm1 = vcmp.eq.s32.totalorder %v25_v8, %v28_v9 }
  0x97   :  { %v30_v11 = vsel %vm29_vm1, %v12_v0, 0.0 }
  0x98   :  { %v31_v13 = vsel %vm14_vm0, %v30_v11, 0.0 }
  0x9f   :  { %v102_v10 = vpop.eup %101 }
  0xa0   :  { %v21_v12 = vsel %vm14_vm0, %v102_v10, 0.0 }
  0xa1   :  { %22 = vadd.xlane.f32.xlu1 %v21_v12 }
  0xa5   :  { %32 = vadd.xlane.f32.xlu1 %v31_v13 }
 0x12a   :  { %v23_v14 = vpop.xlane.xlu1 %22 }
 0x12b   :  { %103 = vlog2.f32 %v23_v14 }
 0x12e   :  { %v33_v15 = vpop.xlane.xlu1 %32 }
 0x12f   :  { %v34_v18 = vsub.f32 %v33_v15, %v17_v4 }
 0x138   :  { %v104_v16 = vpop.eup %103 }
 0x139   :  { %v36_v17 = vmul.f32 0.6931472, %v104_v16 }
 0x13b   :  { %v37_v19 = vsub.f32 %v34_v18, %v36_v17 }
 0x13d   :  { %v38_v20 = vmul.f32 1.442695, %v37_v19 }
 0x13f   :  { %105 = vpow2.f32 %v38_v20 }
 0x14c   :  { %v106_v21 = vpop.eup %105 }
 0x14d   :  { %v40_v22 = vadd.f32 1e-10, %v106_v21 }
 0x14f   :  { %v76_v23 = vand.u32 2147483647, %v40_v22  ;;  %vm80_vm2 = vcmp.lt.f32.partialorder %v40_v22, 0  ;;  %vm81_vm3 = vcmp.eq.f32.partialorder %v40_v22, 0  ;;  %vm93_vm5 = vcmp.ne.f32.partialorder %v40_v22, %v40_v22 }
 0x150   :  { %vm82_vm6 = vcmp.eq.f32.partialorder %v40_v22, 1065353216 }
 0x151   :  { %107 = vlog2.f32 %v76_v23  ;;  %vm85_vm4 = vcmp.eq.f32.partialorder %v76_v23, 2139095040 }
 0x15e   :  { %v108_v24 = vpop.eup %107 }
 0x15f   :  { %v78_v25 = vmul.f32 0.7, %v108_v24 }
 0x161   :  { %109 = vpow2.f32 %v78_v25 }
 0x16e   :  { %v110_v26 = vpop.eup %109 }
 0x16f   :  { %v86_v27 = vsel %vm80_vm2, 2143289344, %v110_v26 }
 0x170   :  { %v87_v28 = vsel %vm81_vm3, 0, %v86_v27 }
 0x171   :  { %v92_v29 = vsel %vm85_vm4, 2139095040, %v87_v28 }
 0x172   :  { %v96_v30 = vsel %vm93_vm5, 2143289344, %v92_v29 }
 0x173   :  { %v97_v31 = vsel %vm82_vm6, 1065353216, %v96_v30 }
 0x174   :  { %v42_v32 = vsub.f32 1.0, %v97_v31 }
 0x176   :  { %v43_v33 = vmul.f32 1.4285715, %v42_v32 }
 0x178   :  { %v51_v34 = vrot.slane %v43_v33, 4 }
 0x17a   :  { %v52_v35 = vadd.f32 %v51_v34, %v43_v33 }
 0x17c   :  { %v53_v36 = vrot.slane %v52_v35, 2 }
 0x17e   :  { %v54_v37 = vadd.f32 %v53_v36, %v52_v35 }
 0x180   :  { %v55_v38 = vrot.slane %v54_v37, 1 }
 0x182   :  { %v56_v39 = vadd.f32 %v55_v38, %v54_v37 }
 0x184   :  { %57 = vst [vmem:[#allocation2] sm:$0xff] %v56_v39 }
 0x185   :  { %122 = shalt.err (!%p119_p4)
}
 0x186   :  { %67 = dma.vmem_to_hbm [thread:$0]  %s65_s1, 128, %s164_s2, [#allocation3]  }
 0x187   :  { %131 = dma.done.wait [#allocation3], 128  }
 0x188   :  { %132 = vsyncadd [#allocation3], 4294967168 }
 0x189   :  { %71 = vsyncpa [#allocation3], 1 }

</bundles_post_ra>
